<compile_context>
chip_gen: v7x
topology: tpu7x:2x2x1
jax: 0.10.0
libtpu: 0.0.40
codegen_flags: <defaults>
</compile_context>

<pallas_src>
import functools

import jax
import jax.numpy as jnp
from jax.experimental import pallas as pl
from jax.experimental.pallas import tpu as pltpu


def tavat_kernel(theta_ref, emb_ref, dlb_ref, dtok_ref, w_ref, b_ref,
                 embeds_out_ref, logits_out_ref, *, approx_recip):
    # theta_ref: (2, tS, H)   emb/dlb/dtok: (1, tS, H)   w: (H, LP)   b: (1, LP)
    t0 = theta_ref[0].astype(jnp.float32)            # (tS, H)
    t1 = theta_ref[1].astype(jnp.float32)            # (tS, H)
    # 2-way softmax over the leading axis written as a sigmoid:
    #   s0 = 1 / (1 + exp(t1 - t0)),  s1 = 1 - s0
    # One EUP exp instead of two, no max / extra add.  exp overflow to +inf for a
    # huge theta gap gives 1/inf = 0, which matches the softmax limit, so no
    # max-subtraction is required for correctness.
    s0 = pl.reciprocal(1.0 + jnp.exp(t1 - t0), approx=approx_recip)
    s1 = 1.0 - s0

    emb = (emb_ref[0].astype(jnp.float32)
           + dlb_ref[0].astype(jnp.float32) * s0
           + dtok_ref[0].astype(jnp.float32) * s1)    # (tS, H) in f32
    embeds_out_ref[0] = emb.astype(embeds_out_ref.dtype)

    # Token-classification head (MXU matmul, lane-dense 128-wide padded N).
    logits = jnp.dot(emb, w_ref[...], preferred_element_type=jnp.float32)
    logits = logits + b_ref[...]                      # (tS, LP) + (1, LP)
    logits_out_ref[0] = logits.astype(logits_out_ref.dtype)


def _vmem_capacity_bytes():
    """Physical VMEM of the attached TPU; conservative (v7x-sized) fallback."""
    try:
        return int(pltpu.get_tpu_info().vmem_capacity_bytes)
    except Exception:
        return 64 << 20


def _footprint_bytes(tile_s, H, LP, theta_isz, act_isz, w_isz, logits_isz):
    """Double-buffered VMEM footprint of one grid step (tiles + classifier W/b)."""
    per_step = (2 * tile_s * H * theta_isz        # theta block (2, tS, H)
                + 3 * tile_s * H * act_isz        # embeds_init / delta_lb / delta_tok
                + tile_s * H * act_isz            # embeds_out
                + tile_s * LP * logits_isz)       # padded logits out
    weights = H * LP * w_isz + LP * w_isz         # classifier W + bias
    return 2 * (per_step + weights)


def _choose_tile_s(S, H, LP, theta_isz, act_isz, w_isz, logits_isz, budget):
    """Largest seq tile dividing S whose double-buffered footprint fits `budget`."""
    for cand in (1024, 512, 256, 128, 64, 32, 16, 8):
        if cand <= S and S % cand == 0:
            if _footprint_bytes(cand, H, LP, theta_isz, act_isz,
                                w_isz, logits_isz) <= budget:
                return cand
    return S


def tavat_forward(theta, embeds_init, delta_lb, delta_tok, w_cls, b_cls,
                  tile_s=None, logits_dtype=jnp.float32, approx_recip=False):
    """theta: (2, 1, S, H); embeds_init/delta_lb/delta_tok: (B, S, H);
       w_cls: (H, L); b_cls: (L,).

    Returns (inputs_embeds[B, S, H], logits_padded[B, S, LP]) with
    LP = ceil(L/128)*128.  Columns [L:LP] of the logits are exactly zero; the
    downstream loss should slice/mask them inside its own fusion (returning the
    padded slab avoids an extra full-HBM slice pass here).
    """
    B, S, H = embeds_init.shape
    L = w_cls.shape[1]
    LP = pl.cdiv(L, 128) * 128              # lane-dense padded label dim

    theta_sq = theta[:, 0, :, :]            # (2, S, H) — broadcast dim squeezed here

    # Classifier kept at f32 (tiny; fetched once thanks to the constant block index)
    # and zero-padded so the padded logit columns are exactly zero.
    w_pad = jnp.zeros((H, LP), jnp.float32).at[:, :L].set(w_cls.astype(jnp.float32))
    b_pad = jnp.zeros((1, LP), jnp.float32).at[0, :L].set(b_cls.astype(jnp.float32))

    theta_isz = jnp.dtype(theta_sq.dtype).itemsize
    act_isz = jnp.dtype(embeds_init.dtype).itemsize
    w_isz = 4
    logits_isz = jnp.dtype(logits_dtype).itemsize

    # Generation-aware budgets: big tiles on 128 MiB parts, tight cap on 64 MiB v7x.
    phys_vmem = _vmem_capacity_bytes()
    if phys_vmem >= (96 << 20):             # v5e / v6e: 128 MiB physical VMEM
        select_budget = 56 << 20
        vmem_cap = 96 << 20
    else:                                   # v7x: 64 MiB physical VMEM
        select_budget = 24 << 20
        vmem_cap = int(0.6 * phys_vmem)

    if tile_s is None:
        tile_s = _choose_tile_s(S, H, LP, theta_isz, act_isz, w_isz, logits_isz,
                                select_budget)
    assert S % tile_s == 0, "sequence length must be divisible by the seq tile"
    n_s = S // tile_s

    foot = _footprint_bytes(tile_s, H, LP, theta_isz, act_isz, w_isz, logits_isz)
    vmem_limit = min(max(int(1.5 * foot) + (4 << 20), 16 << 20), vmem_cap)

    # Seq tiles outermost, batch innermost: theta / W / b block indices are constant
    # over the inner batch loop, so their HBM->VMEM DMAs are elided after the first
    # batch element of each seq tile.
    grid = (n_s, B)

    kernel = functools.partial(tavat_kernel, approx_recip=approx_recip)
    f = pl.pallas_call(
        kernel,
        out_shape=(
            jax.ShapeDtypeStruct((B, S, H), embeds_init.dtype),
            jax.ShapeDtypeStruct((B, S, LP), logits_dtype),
        ),
        grid_spec=pltpu.PrefetchScalarGridSpec(
            num_scalar_prefetch=0,
            grid=grid,
            in_specs=[
                pl.BlockSpec((2, tile_s, H), lambda s, b: (0, s, 0)),   # theta (shared over b)
                pl.BlockSpec((1, tile_s, H), lambda s, b: (b, s, 0)),   # embeds_init
                pl.BlockSpec((1, tile_s, H), lambda s, b: (b, s, 0)),   # delta_lb
                pl.BlockSpec((1, tile_s, H), lambda s, b: (b, s, 0)),   # delta_tok
                pl.BlockSpec((H, LP),        lambda s, b: (0, 0)),      # classifier W (padded)
                pl.BlockSpec((1, LP),        lambda s, b: (0, 0)),      # classifier b (padded)
            ],
            out_specs=[
                pl.BlockSpec((1, tile_s, H),  lambda s, b: (b, s, 0)),
                pl.BlockSpec((1, tile_s, LP), lambda s, b: (b, s, 0)),
            ],
        ),
        compiler_params=pltpu.CompilerParams(
            dimension_semantics=("parallel", "parallel"),
            vmem_limit_bytes=vmem_limit),
    )
    return f(theta_sq, embeds_init, delta_lb, delta_tok, w_pad, b_pad)


if __name__ == "__main__":
    # Small shapes consistent with the module's forward: (B, S, H) activations,
    # a (2, 1, S, H) theta parameter, num_labels = 9 (CoNLL NER label list).
    # S/H kept small vs the real 256/768 but large enough to exercise the
    # seq-tiled grid (tile_s=128 -> grid=(2, 2)) and the theta-resident reuse.
    B, S, H, L = 2, 256, 128, 9

    key = jax.random.PRNGKey(0)
    k1, k2, k3, k4, k5 = jax.random.split(key, 5)

    # Module init uses torch.zeros for theta; use small random values here to
    # actually exercise the 2-way softmax path.
    theta = jax.random.normal(k5, (2, 1, S, H), dtype=jnp.float32) * 0.5
    # Deterministic synthetic classifier head (stands in for the pretrained one).
    w_cls = jax.random.normal(k4, (H, L), dtype=jnp.float32) * 0.02
    b_cls = jnp.zeros((L,), dtype=jnp.float32)

    embeds_init = jax.random.normal(k1, (B, S, H), dtype=jnp.float32)
    delta_lb    = jax.random.normal(k2, (B, S, H), dtype=jnp.float32) * 0.1
    delta_tok   = jax.random.normal(k3, (B, S, H), dtype=jnp.float32) * 0.1

    # ---------------- f32 path ----------------
    inputs_embeds, logits_padded = tavat_forward(theta, embeds_init, delta_lb,
                                                 delta_tok, w_cls, b_cls,
                                                 tile_s=128)
    jax.block_until_ready((inputs_embeds, logits_padded))

    # Pure-JAX reference (mirrors the PyTorch math).
    thetasoft = jax.nn.softmax(theta, axis=0)                  # (2, 1, S, H)
    ref_emb = (embeds_init
               + delta_lb * thetasoft[0]
               + delta_tok * thetasoft[1])
    ref_logits = jnp.einsum("bsh,hl->bsl", ref_emb, w_cls) + b_cls

    assert inputs_embeds.shape == (B, S, H)
    assert logits_padded.shape == (B, S, 128)
    assert bool(jnp.all(logits_padded[:, :, L:] == 0.0))       # zero-padded columns
    assert jnp.allclose(inputs_embeds, ref_emb, atol=1e-5, rtol=1e-5)
    assert jnp.allclose(logits_padded[:, :, :L], ref_logits, atol=1e-4, rtol=1e-4)

    # ---------------- bf16 path (halved HBM traffic) ----------------
    theta_bf = theta.astype(jnp.bfloat16)
    emb_bf   = embeds_init.astype(jnp.bfloat16)
    dlb_bf   = delta_lb.astype(jnp.bfloat16)
    dtok_bf  = delta_tok.astype(jnp.bfloat16)

    emb_out_bf, logits_bf = tavat_forward(theta_bf, emb_bf, dlb_bf, dtok_bf,
                                          w_cls, b_cls, tile_s=128)
    jax.block_until_ready((emb_out_bf, logits_bf))

    ts_bf = jax.nn.softmax(theta_bf.astype(jnp.float32), axis=0)
    ref_emb_bf = (emb_bf.astype(jnp.float32)
                  + dlb_bf.astype(jnp.float32) * ts_bf[0]
                  + dtok_bf.astype(jnp.float32) * ts_bf[1])
    ref_logits_bf = jnp.einsum("bsh,hl->bsl", ref_emb_bf, w_cls) + b_cls

    assert emb_out_bf.dtype == jnp.bfloat16 and emb_out_bf.shape == (B, S, H)
    assert logits_bf.shape == (B, S, 128)
    # embeds_out is rounded to bf16 on writeback -> loose tolerance.
    assert jnp.allclose(emb_out_bf.astype(jnp.float32), ref_emb_bf,
                        atol=5e-2, rtol=5e-2)
    # logits come from the f32 in-kernel accumulator -> tight tolerance.
    assert jnp.allclose(logits_bf[:, :, :L], ref_logits_bf, atol=1e-3, rtol=1e-3)

    print("KERNEL_OK")
</pallas_src>

<mosaic_0001>
module attributes {stable_mosaic.version = 11 : i64} {
  func.func @tavat_kernel(%arg0: i32, %arg1: i32, %arg2: memref<2x128x128xf32, #tpu.memory_space<vmem>>, %arg3: memref<1x128x128xf32, #tpu.memory_space<vmem>>, %arg4: memref<1x128x128xf32, #tpu.memory_space<vmem>>, %arg5: memref<1x128x128xf32, #tpu.memory_space<vmem>>, %arg6: memref<128x128xf32, #tpu.memory_space<vmem>>, %arg7: memref<1x128xf32, #tpu.memory_space<vmem>>, %arg8: memref<1x128x128xf32, #tpu.memory_space<vmem>>, %arg9: memref<1x128x128xf32, #tpu.memory_space<vmem>>) attributes {dimension_semantics = [#tpu.dimension_semantics<parallel>, #tpu.dimension_semantics<parallel>], iteration_bounds = array<i64: 2, 2>, scalar_prefetch = 0 : i64, scratch_operands = 0 : i64, tpu.core_type = #tpu.core_type<tc>, window_params = [{transform_indices = @transform_0, window_bounds = array<i64: 2, 128, 128>}, {transform_indices = @transform_1, window_bounds = array<i64: 1, 128, 128>}, {transform_indices = @transform_2, window_bounds = array<i64: 1, 128, 128>}, {transform_indices = @transform_3, window_bounds = array<i64: 1, 128, 128>}, {pipeline_mode = #tpu.pipeline_mode<synchronous>, transform_indices = @transform_4, window_bounds = array<i64: 128, 128>}, {pipeline_mode = #tpu.pipeline_mode<synchronous>, transform_indices = @transform_5, window_bounds = array<i64: 1, 128>}, {transform_indices = @transform_6, window_bounds = array<i64: 1, 128, 128>}, {transform_indices = @transform_7, window_bounds = array<i64: 1, 128, 128>}]} {
    %c0 = arith.constant 0 : index
    %c0_0 = arith.constant 0 : index
    %c0_1 = arith.constant 0 : index
    %0 = vector.load %arg2[%c0, %c0_0, %c0_1] : memref<2x128x128xf32, #tpu.memory_space<vmem>>, vector<1x128x128xf32>
    %1 = vector.shape_cast %0 : vector<1x128x128xf32> to vector<128x128xf32>
    %c1 = arith.constant 1 : index
    %c0_2 = arith.constant 0 : index
    %c0_3 = arith.constant 0 : index
    %2 = vector.load %arg2[%c1, %c0_2, %c0_3] : memref<2x128x128xf32, #tpu.memory_space<vmem>>, vector<1x128x128xf32>
    %3 = vector.shape_cast %2 : vector<1x128x128xf32> to vector<128x128xf32>
    %4 = arith.subf %3, %1 : vector<128x128xf32>
    %5 = math.exp %4 : vector<128x128xf32>
    %cst = arith.constant 1.000000e+00 : f32
    %6 = vector.broadcast %cst : f32 to vector<128x128xf32>
    %7 = arith.addf %6, %5 : vector<128x128xf32>
    %8 = tpu.reciprocal %7 : vector<128x128xf32> -> vector<128x128xf32>
    %cst_4 = arith.constant 1.000000e+00 : f32
    %9 = vector.broadcast %cst_4 : f32 to vector<128x128xf32>
    %10 = arith.subf %9, %8 : vector<128x128xf32>
    %c0_5 = arith.constant 0 : index
    %c0_6 = arith.constant 0 : index
    %c0_7 = arith.constant 0 : index
    %11 = vector.load %arg3[%c0_5, %c0_6, %c0_7] : memref<1x128x128xf32, #tpu.memory_space<vmem>>, vector<1x128x128xf32>
    %12 = vector.shape_cast %11 : vector<1x128x128xf32> to vector<128x128xf32>
    %c0_8 = arith.constant 0 : index
    %c0_9 = arith.constant 0 : index
    %c0_10 = arith.constant 0 : index
    %13 = vector.load %arg4[%c0_8, %c0_9, %c0_10] : memref<1x128x128xf32, #tpu.memory_space<vmem>>, vector<1x128x128xf32>
    %14 = vector.shape_cast %13 : vector<1x128x128xf32> to vector<128x128xf32>
    %15 = arith.mulf %14, %8 : vector<128x128xf32>
    %16 = arith.addf %12, %15 : vector<128x128xf32>
    %c0_11 = arith.constant 0 : index
    %c0_12 = arith.constant 0 : index
    %c0_13 = arith.constant 0 : index
    %17 = vector.load %arg5[%c0_11, %c0_12, %c0_13] : memref<1x128x128xf32, #tpu.memory_space<vmem>>, vector<1x128x128xf32>
    %18 = vector.shape_cast %17 : vector<1x128x128xf32> to vector<128x128xf32>
    %19 = arith.mulf %18, %10 : vector<128x128xf32>
    %20 = arith.addf %16, %19 : vector<128x128xf32>
    %c0_14 = arith.constant 0 : index
    %c0_15 = arith.constant 0 : index
    %c0_16 = arith.constant 0 : index
    %21 = vector.load %arg8[%c0_14, %c0_15, %c0_16] : memref<1x128x128xf32, #tpu.memory_space<vmem>>, vector<1x128x128xf32>
    %22 = vector.shape_cast %21 : vector<1x128x128xf32> to vector<128x128xf32>
    %23 = vector.shape_cast %20 : vector<128x128xf32> to vector<1x128x128xf32>
    tpu.vector_store %arg8[%c0_14, %c0_15, %c0_16], %23 {strides = array<i32>} : memref<1x128x128xf32, #tpu.memory_space<vmem>>, vector<1x128x128xf32>,
    %c0_17 = arith.constant 0 : index
    %c0_18 = arith.constant 0 : index
    %24 = vector.load %arg6[%c0_17, %c0_18] : memref<128x128xf32, #tpu.memory_space<vmem>>, vector<128x128xf32>
    %cst_19 = arith.constant dense<0.000000e+00> : vector<128x128xf32>
    %25 = tpu.matmul %20, %24, %cst_19 {dimension_numbers = #tpu.dot_dimension_numbers<[1], [0], [0], [1], [0, 0, 1, 1], [], []>} : vector<128x128xf32>, vector<128x128xf32>, vector<128x128xf32> -> vector<128x128xf32>
    %c0_20 = arith.constant 0 : index
    %c0_21 = arith.constant 0 : index
    %26 = vector.load %arg7[%c0_20, %c0_21] : memref<1x128xf32, #tpu.memory_space<vmem>>, vector<1x128xf32>
    %27 = vector.broadcast %26 : vector<1x128xf32> to vector<128x128xf32>
    %28 = arith.addf %25, %27 : vector<128x128xf32>
    %c0_22 = arith.constant 0 : index
    %c0_23 = arith.constant 0 : index
    %c0_24 = arith.constant 0 : index
    %29 = vector.load %arg9[%c0_22, %c0_23, %c0_24] : memref<1x128x128xf32, #tpu.memory_space<vmem>>, vector<1x128x128xf32>
    %30 = vector.shape_cast %29 : vector<1x128x128xf32> to vector<128x128xf32>
    %31 = vector.shape_cast %28 : vector<128x128xf32> to vector<1x128x128xf32>
    tpu.vector_store %arg9[%c0_22, %c0_23, %c0_24], %31 {strides = array<i32>} : memref<1x128x128xf32, #tpu.memory_space<vmem>>, vector<1x128x128xf32>,
    return
  }
  func.func @transform_0(%arg0: i32, %arg1: i32) -> (i32, i32, i32) {
    %c0_i32 = arith.constant 0 : i32
    %c0_i32_0 = arith.constant 0 : i32
    %c0_i32_1 = arith.constant 0 : i32
    return %c0_i32, %arg0, %c0_i32_0 : i32, i32, i32
  }
  func.func @transform_1(%arg0: i32, %arg1: i32) -> (i32, i32, i32) {
    %c0_i32 = arith.constant 0 : i32
    %c0_i32_0 = arith.constant 0 : i32
    return %arg1, %arg0, %c0_i32 : i32, i32, i32
  }
  func.func @transform_2(%arg0: i32, %arg1: i32) -> (i32, i32, i32) {
    %c0_i32 = arith.constant 0 : i32
    %c0_i32_0 = arith.constant 0 : i32
    return %arg1, %arg0, %c0_i32 : i32, i32, i32
  }
  func.func @transform_3(%arg0: i32, %arg1: i32) -> (i32, i32, i32) {
    %c0_i32 = arith.constant 0 : i32
    %c0_i32_0 = arith.constant 0 : i32
    return %arg1, %arg0, %c0_i32 : i32, i32, i32
  }
  func.func @transform_4(%arg0: i32, %arg1: i32) -> (i32, i32) {
    %c0_i32 = arith.constant 0 : i32
    %c0_i32_0 = arith.constant 0 : i32
    %c0_i32_1 = arith.constant 0 : i32
    return %c0_i32, %c0_i32_0 : i32, i32
  }
  func.func @transform_5(%arg0: i32, %arg1: i32) -> (i32, i32) {
    %c0_i32 = arith.constant 0 : i32
    %c0_i32_0 = arith.constant 0 : i32
    %c0_i32_1 = arith.constant 0 : i32
    return %c0_i32, %c0_i32_0 : i32, i32
  }
  func.func @transform_6(%arg0: i32, %arg1: i32) -> (i32, i32, i32) {
    %c0_i32 = arith.constant 0 : i32
    %c0_i32_0 = arith.constant 0 : i32
    return %arg1, %arg0, %c0_i32 : i32, i32, i32
  }
  func.func @transform_7(%arg0: i32, %arg1: i32) -> (i32, i32, i32) {
    %c0_i32 = arith.constant 0 : i32
    %c0_i32_0 = arith.constant 0 : i32
    return %arg1, %arg0, %c0_i32 : i32, i32, i32
  }
}

</mosaic_0001>

<bundles_post_ra>
// kernel: tpu_custom_call.1
= control target key start
LH: loop header
LB: loop body
LE: loop exit
PB: predicated region body
PF: predicated region fallthrough
CT: control target
= control target key end

     0   :  { %s2507_s0 = inlined_call_operand.hbm [shape: f32[2,256,128], index: 0, kind: input, shape index: {}]   ;;  %s2508_s1 = inlined_call_operand.hbm [shape: f32[2,256,128], index: 1, kind: input, shape index: {}]   ;;  %s2509_s2 = inlined_call_operand.hbm [shape: f32[2,256,128], index: 2, kind: input, shape index: {}]   ;;  %s2510_s3 = inlined_call_operand.hbm [shape: f32[2,256,128], index: 3, kind: input, shape index: {}]   ;;  %s2511_s4 = inlined_call_operand.hbm [shape: f32[128,128], index: 4, kind: input, shape index: {}]   ;;  %s2512_s5 = inlined_call_operand.vmem [shape: f32[1,128], index: 5, kind: input, shape index: {}]   ;;  %s2513_s6 = inlined_call_operand.hbm [shape: f32[2,256,128], index: 6, kind: output, shape index: {0}]   ;;  %s2514_s7 = inlined_call_operand.hbm [shape: f32[2,256,128], index: 7, kind: output, shape index: {1}]  }
   0x1   :  { %2531 = sst [smem:[#allocation32_spill]] %s2511_s4 }
   0x2   :  { %2532 = sst [smem:[#allocation33_spill]] %s2512_s5 }
   0x3   :  { %2533 = sst [smem:[#allocation34_spill]] %s2513_s6 }
   0x4   :  { %2534 = sst [smem:[#allocation35_spill]] %s2514_s7 }
   0x5   :  { %13 = vsyncpa [#allocation3], 0 }
   0x6   :  { %15 = vsyncpa [#allocation3 + $0x1], 0 }
   0x7   :  { %16 = vsyncpa [#allocation6], 0 }
   0x8   :  { %18 = vsyncpa [#allocation6 + $0x1], 0 }
   0x9   :  { %19 = vsyncpa [#allocation9], 0 }
   0xa   :  { %21 = vsyncpa [#allocation9 + $0x1], 0 }
   0xb   :  { %22 = vsyncpa [#allocation4], 0 }
   0xc   :  { %24 = vsyncpa [#allocation4 + $0x1], 0 }
   0xd   :  { %25 = vsyncpa [#allocation13], 0 }
   0xe   :  { %27 = vsyncpa [#allocation13 + $0x1], 0  ;;  %s1918_s24 = smov 0   ;;  %s1920_s25 = smov 0  }
   0xf   :  { %s1922_s26 = smov 0   ;;  %s1924_s27 = smov 0  }
  0x10   :  { %s1926_s28 = smov 0   ;;  %s1928_s29 = smov 0  }
  0x11   :  { %s1930_s30 = smov 0   ;;  %s1932_s8 = smov 0  }
  0x12   :  { %s1934_s9 = smov 0   ;;  %s1936_s10 = smov 0  }
  0x13   :  { %s1938_s11 = smov 0  }
  0x14 LB: > { %2535 = sst [smem:[#allocation23_spill]] %s1818_s24  ;;  %s1972_s12 = sadd.s32 4294967295, %s1858_s11   ;;  %s1858_s11 = sphi %s1938_s11, %s33_s11   ;;  %s1854_s10 = sphi %s1936_s10, %s2583_s10   ;;  %s1850_s9 = sphi %s1934_s9, %s2582_s9   ;;  %s1846_s8 = sphi %s1932_s8, %s2581_s8   ;;  %s1842_s30 = sphi %s1930_s30, %s2580_s30   ;;  %s1838_s29 = sphi %s1928_s29, %s2572_s29   ;;  %s1834_s28 = sphi %s1926_s28, %s2579_s28   ;;  %s1830_s27 = sphi %s1924_s27, %s2578_s27   ;;  %s1826_s26 = sphi %s1922_s26, %s2577_s26   ;;  %s1822_s25 = sphi %s1920_s25, %s2576_s25   ;;  %s1818_s24 = sphi %s1918_s24, %s2575_s24  }
  0x15   : > { %2536 = sst [smem:[#allocation24_spill]] %s1838_s29  ;;  %s1185_s13 = sadd.s32 4294967294, %s1858_s11  }
  0x16   : > { %2537 = sst [smem:[#allocation25_spill]] %s1842_s30  ;;  %s42_s14 = sadd.s32 1, %s1850_s9 }
  0x17   : > { %s45_s15 = sadd.s32 1, %s1854_s10  ;;  %p43_p0 = scmp.ge.s32.totalorder %s42_s14, 2 }
  0x18   : > { %s52_s16 = sadd.s32 1, %s1838_s29  ;;  %p59_p1 = scmp.ne.s32.totalorder %s1838_s29, %s1834_s28 }
  0x19   : > { %p60_p2 = scmp.eq.s32.totalorder %s1858_s11, 0  ;;  %s2585_s14 = smov (%p43_p0, %s42_s14), 0 }
  0x1a   : > { %2538 = sst [smem:[#allocation26_spill]] %s2585_s14  ;;  %s2587_s15 = smov (!%p43_p0, %s45_s15), %s1854_s10 }
  0x1b   : > { %p1986_p3 = por %p60_p2, %p59_p1  ;;  %p65_p4 = scmp.ne.s32.totalorder %s1834_s28, %s1830_s27 }
  0x1c   : > { %p47_p5 = scmp.ge.s32.totalorder %s2587_s15, 2  ;;  %p2517_p6 = scmp.eq.s32.totalorder %s1972_s12, 0 }
  0x1d   : > { %s2539_s17 = scalar_select %p1986_p3, 1, 0 }
  0x1e   : > { %s75_s18 = ssub.s32 %s1850_s9, %s2585_s14  ;;  %s80_s19 = sadd.s32 1, %s1826_s26 }
  0x1f   : > { %s2589_s15 = smov (%p47_p5, %s2587_s15), 0  ;;  %p1999_p7 = por %p2517_p6, %p65_p4 }
  0x20   : > { %2540 = sst [smem:[#allocation27_spill]] %s2589_s15  ;;  %p87_p8 = scmp.ne.s32.totalorder %s1826_s26, %s1822_s25 }
  0x21   : > { %s2541_s20 = scalar_select %p1999_p7, 1, 0 }
  0x22   : > { %s49_s21 = ssub.s32 %s1854_s10, %s2589_s15  ;;  %p93_p9 = scmp.ne.s32.totalorder %s1822_s25, %s1818_s24 }
  0x23   : > { %p50_p10 = scmp.eq.s32.totalorder %s49_s21, 0  ;;  %s77_s22 = sor.u32 %s75_s18, %s49_s21 }
  0x24   : > { %p78_p11 = scmp.eq.s32.totalorder %s77_s22, 0  ;;  %p2014_p12 = por %p87_p8, %p60_p2 }
  0x25   : > { %s2019_s27 = scalar_select %p50_p10, %s1838_s29, %s52_s16  }
  0x26   : > { %s2542_s23 = scalar_select %p2014_p12, 1, 0 }
  0x27   : > { %2543 = sst [smem:[#allocation28_spill]] %s2019_s27  ;;  %p2029_p13 = por %p93_p9, %p2517_p6 }
  0x28   : > { %s2022_s14 = scalar_select %p78_p11, %s1826_s26, %s80_s19  }
  0x29   : > { %s2545_s7 = scalar_select %p2029_p13, 1, 0 }
  0x2a   : > { %2544 = sst [smem:[#allocation29_spill]] %s2022_s14  ;;  %p217_p0 = scmp.eq.s32.totalorder %s1972_s12, 3 }
  0x2b   : > { %p223_p1 = scmp.eq.s32.totalorder %s1185_s13, 3  ;;  %p1186_p4 = scmp.ge.s32.totalorder %s1858_s11, 1 }
  0x2c   : > { %p2038_p5 = por %p217_p0, %p87_p8  ;;  %p258_p2 = scmp.lt.s32.totalorder %s1858_s11, 5 }
  0x2d   : > { %p2046_p10 = por %p223_p1, %p93_p9  ;;  %s1860_s21 = smov [#allocation10]  }
  0x2e   : > { %s2546_s18 = scalar_select %p2038_p5, 1, 0 }
  0x2f   : > { %s2548_s16 = scalar_select %p2046_p10, 1, 0 }
  0x30   : > { %2547 = sst [smem:[#allocation30_spill]] %s2546_s18  ;;  %p2050_p11 = pnand %p1186_p4, %p258_p2 }
  0x31   : > { %2549 = sst [smem:[#allocation31_spill]] %s2548_s16  ;;  %s270_s22 = sshll.u32 %s1860_s21, 4  ;;  %s271_s22 = int_to_ptr.vmem [resolvable:$true] %s270_s22 }
  0x32   : > { %s2550_s19 = scalar_select %p2050_p11, 1, 0 }
  0x33   : > { %p1401_p6 = pneg %p2050_p11  ;;  %p2551_p8 = scmp.eq.s32.totalorder %s1972_s12, 0 }
  0x34   : > { %s2553_s4 = sld [smem:[#allocation32_spill]] }
  0x35   : > { %p2058_p0 = pnand %p1401_p6, %p2551_p8 }
  0x37   : > { %p1582_p1 = pneg %p2058_p0 }
  0x3a   : > { %s1580_s14 = scalar_lea.hbm %s2553_s4, 2048 }
  0x3b   : > { %p1581_p9 = scmp.ne.s32.totalorder %s2553_s4, %s1580_s14  ;;  %p1587_p6 = scmp.lt.u32.totalorder %s1580_s14, %s2553_s4 }
  0x3d   : > { %p1583_p4 = pnand %p1582_p1, %p1581_p9 }
  0x3f   : > { %p1584_p2 = pneg %p1583_p4 }
  0x41   : > { %p1589_p8 = pnand %p1587_p6, %p1584_p2 }
  0x43   : > { %1592 = shalt.err (!%p1589_p8)
}
  0x44   : > { %s1593_s6 = scalar_lea.vmem %s271_s22, 2048  ;;  %p1601_p7 = scmp.lt.s32.totalorder %s271_s22, %s271_s22 }
  0x45   : > { %p1594_p10 = scmp.ne.s32.totalorder %s271_s22, %s1593_s6  ;;  %p1602_p11 = scmp.lt.s32.totalorder %s1593_s6, %s1593_s6 }
  0x47   : > { %p1596_p5 = pnand %p1594_p10, %p1582_p1  ;;  %p1603_p12 = por %p1602_p11, %p1601_p7 }
  0x49   : > { %p1597_p13 = pneg %p1596_p5 }
  0x4b   : > { %p1604_p3 = pnand %p1603_p12, %p1597_p13 }
  0x4d   : > { %1607 = shalt.err (!%p1604_p3)
}
  0x4e   : > { %s1861_s24 = smov 128   ;;  %s1862_s15 = smov 8  }
  0x4f   : > { %1404 = dma.hbm_to_vmem [thread:$0]  (!%p2058_p0), %s2553_s4, 2048, %s271_s22, [#allocation9], %s1861_s24, %s1861_s24, %s1862_s15  }
  0x50   : > { %p1188_p9 = scmp.ge.s32.totalorder %s1858_s11, 4 }
  0x52   : > { %283 = sbr.rel (%p1188_p9) target bundleno = 178 (0xb2), region = 24 }
  0x59   : > { %s287_s5 = sand.u32 1, %s1838_s29   ;;  %s1241_s6 = sshll.u32 %s1854_s10, 11 }
  0x5a   : > { %s1189_s14 = sshll.u32 %s287_s5, 8  ;;  %s297_s18 = scalar_lea.hbm %s2507_s0, %s1241_s6 }
  0x5b   : > { %p2554_p3 = scmp.ne.s32.totalorder %s2539_s17, 0  ;;  %s291_s24 = scalar_lea.vmem [#allocation2], %s1189_s14 }
  0x5c   : > { %s310_s15 = sshll.u32 %s291_s24, 4  ;;  %s1863_s16 = smov 4096   ;;  %s311_s15 = int_to_ptr.vmem [resolvable:$true] %s310_s15 }
  0x5d   : > { %s1380_s22 = scalar_select %p2554_p3, [#allocation0], [#allocation16] }
  0x5e   : > { %1381 = sst [smem:[#allocation15]] (%p2554_p3), %s1863_s16  ;;  %s1864_s4 = smov 2048  }
  0x5f   : > { %s302_s27 = sld [smem:[%s1380_s22]]   ;;  %s1865_s29 = smov 16  }
  0x60   : > { %1382 = sst [smem:[#allocation15 + $0x1]] (%p2554_p3), %s1864_s4  ;;  %s1866_s30 = smov 128  }
  0x61   : > { %1383 = sst [smem:[#allocation15 + $0x2]] (%p2554_p3), %s1865_s29  ;;  %s1867_s14 = smov 8  }
  0x62   : > { %1384 = sst [smem:[#allocation15 + $0x3]] (%p2554_p3), %s1866_s30  ;;  %s288_s13 = scalar_lea.sflag [#allocation3], %s287_s5 }
  0x63   : > { %1385 = sst [smem:[#allocation15 + $0x4]] (%p2554_p3), %s1866_s30  ;;  %s1868_s22 = smov [#allocation14]  }
  0x64   : > { %1386 = sst [smem:[#allocation15 + $0x5]] (%p2554_p3), %s1867_s14  ;;  %s333_s4 = sand.u32 1, %s1858_s11  }
  0x65   : > { %s1192_s6 = sshll.u32 %s302_s27, 26  ;;  %s335_s29 = sand.u32 1, %s1826_s26  }
  0x66   : > { %s1193_s21 = sadd.s32 134217728, %s1192_s6  ;;  %s2102_s24 = sshll.u32 %s335_s29, 7 }
  0x67   : > { %1387 = dma.general (%p2554_p3), %s297_s18, 4096, %s311_s15, %s288_s13, %s1868_s22, [#allocation15], %s1193_s21, 0  }
  0x68   : > { %s1195_s30 = sshll.u32 %s1854_s10, 4  ;;  %s1196_s27 = sshll.u32 %s1850_s9, 5 }
  0x69   : > { %s337_s16 = scalar_lea.vmem [#allocation5], %s2102_s24  ;;  %s343_s6 = sadd.s32 %s1196_s27, %s1195_s30 }
  0x6a   : > { %s346_s14 = sshll.u32 %s337_s16, 4  ;;  %s2109_s17 = sshll.u32 %s343_s6, 7  ;;  %s2107_s14 = int_to_ptr.vmem [resolvable:$true] %s346_s14 }
  0x6b   : > { %s2115_s15 = scalar_lea.hbm %s2508_s1, %s2109_s17  ;;  %s2119_s21 = scalar_lea.sflag [#allocation6], %s333_s4 }
  0x6c   : > { %s1608_s13 = scalar_lea.hbm %s2115_s15, 2048  ;;  %p2555_p12 = scmp.ne.s32.totalorder %s2542_s23, 0 }
  0x6d   : > { %p1609_p7 = scmp.ne.s32.totalorder %s2115_s15, %s1608_s13  ;;  %s1612_s30 = scalar_lea.hbm %s2508_s1, 8192 }
  0x6e   : > { %p1613_p10 = scmp.lt.u32.totalorder %s2115_s15, %s2508_s1  ;;  %p1614_p11 = scmp.lt.u32.totalorder %s1612_s30, %s1608_s13 }
  0x6f   : > { %p1610_p13 = pnand %p1609_p7, %p2555_p12  ;;  %p1616_p1 = scmp.lt.u32.totalorder %s1608_s13, %s2115_s15 }
  0x70   : > { %p1615_p0 = por %p1614_p11, %p1613_p10 }
  0x71   : > { %p1611_p5 = pneg %p1610_p13 }
  0x72   : > { %p1617_p4 = por %p1616_p1, %p1615_p0 }
  0x74   : > { %p1618_p2 = pnand %p1617_p4, %p1611_p5 }
  0x76   : > { %1621 = shalt.err (!%p1618_p2)
}
  0x77   : > { %s1622_s6 = scalar_lea.vmem %s2107_s14, 2048  ;;  %s1869_s18 = smov [#allocation5]  }
  0x78   : > { %p1623_p6 = scmp.ne.s32.totalorder %s2107_s14, %s1622_s6  ;;  %s1626_s5 = sshll.u32 %s1869_s18, 4  ;;  %s1627_s5 = int_to_ptr.vmem [resolvable:$false] %s1626_s5 }
  0x79   : > { %s1628_s22 = scalar_lea.vmem %s1627_s5, 4096  ;;  %p1629_p3 = scmp.lt.s32.totalorder %s2107_s14, %s1627_s5 }
  0x7a   : > { %p1624_p8 = pnand %p1623_p6, %p2555_p12  ;;  %p1630_p7 = scmp.lt.s32.totalorder %s1628_s22, %s1622_s6 }
  0x7c   : > { %p1625_p9 = pneg %p1624_p8  ;;  %p1631_p13 = por %p1630_p7, %p1629_p3 }
  0x7e   : > { %p1632_p10 = pnand %p1631_p13, %p1625_p9 }
  0x80   : > { %1635 = shalt.err (!%p1632_p10)
}
  0x81   : > { %s1870_s13 = smov 128   ;;  %s1871_s29 = smov 8  }
  0x82   : > { %1388 = dma.hbm_to_vmem [thread:$0]  (%p2555_p12), %s2115_s15, 2048, %s2107_s14, %s2119_s21, %s1870_s13, %s1870_s13, %s1871_s29  }
  0x83   : > { %s2150_s16 = scalar_lea.hbm %s2509_s2, %s2109_s17  ;;  %s360_s6 = scalar_lea.vmem [#allocation7], %s2102_s24 }
  0x84   : > { %s369_s18 = sshll.u32 %s360_s6, 4  ;;  %s1636_s5 = scalar_lea.hbm %s2150_s16, 2048  ;;  %s2153_s18 = int_to_ptr.vmem [resolvable:$true] %s369_s18 }
  0x85   : > { %p1637_p5 = scmp.ne.s32.totalorder %s2150_s16, %s1636_s5  ;;  %s1640_s15 = scalar_lea.hbm %s2509_s2, 8192 }
  0x86   : > { %p1641_p1 = scmp.lt.u32.totalorder %s2150_s16, %s2509_s2  ;;  %p1642_p4 = scmp.lt.u32.totalorder %s1640_s15, %s1636_s5 }
  0x87   : > { %p1638_p11 = pnand %p1637_p5, %p2555_p12  ;;  %p1644_p6 = scmp.lt.u32.totalorder %s1636_s5, %s2150_s16 }
  0x88   : > { %p1643_p2 = por %p1642_p4, %p1641_p1 }
  0x89   : > { %p1639_p0 = pneg %p1638_p11 }
  0x8a   : > { %p1645_p8 = por %p1644_p6, %p1643_p2 }
  0x8c   : > { %p1646_p9 = pnand %p1645_p8, %p1639_p0 }
  0x8e   : > { %1649 = shalt.err (!%p1646_p9)
}
  0x8f   : > { %s1650_s6 = scalar_lea.vmem %s2153_s18, 2048  ;;  %s1872_s22 = smov [#allocation7]  }
  0x90   : > { %p1651_p3 = scmp.ne.s32.totalorder %s2153_s18, %s1650_s6  ;;  %s1654_s14 = sshll.u32 %s1872_s22, 4  ;;  %s1655_s14 = int_to_ptr.vmem [resolvable:$false] %s1654_s14 }
  0x91   : > { %s1656_s30 = scalar_lea.vmem %s1655_s14, 4096  ;;  %p1657_p10 = scmp.lt.s32.totalorder %s2153_s18, %s1655_s14 }
  0x92   : > { %p1652_p7 = pnand %p1651_p3, %p2555_p12  ;;  %p1658_p5 = scmp.lt.s32.totalorder %s1656_s30, %s1650_s6 }
  0x94   : > { %p1653_p13 = pneg %p1652_p7  ;;  %p1659_p11 = por %p1658_p5, %p1657_p10 }
  0x96   : > { %p1660_p1 = pnand %p1659_p11, %p1653_p13 }
  0x98   : > { %1663 = shalt.err (!%p1660_p1)
}
  0x99   : > { %1389 = dma.hbm_to_vmem [thread:$0]  (%p2555_p12), %s2150_s16, 2048, %s2153_s18, %s2119_s21, %s1870_s13, %s1870_s13, %s1871_s29  }
  0x9a   : > { %s2184_s27 = scalar_lea.hbm %s2510_s3, %s2109_s17  ;;  %s383_s6 = scalar_lea.vmem [#allocation8], %s2102_s24 }
  0x9b   : > { %s392_s22 = sshll.u32 %s383_s6, 4  ;;  %s2191_s14 = scalar_lea.sflag [#allocation9], %s333_s4  ;;  %s2187_s22 = int_to_ptr.vmem [resolvable:$true] %s392_s22 }
  0x9c   : > { %s1664_s30 = scalar_lea.hbm %s2184_s27, 2048  ;;  %s1668_s17 = scalar_lea.hbm %s2510_s3, 8192 }
  0x9d   : > { %p1665_p0 = scmp.ne.s32.totalorder %s2184_s27, %s1664_s30  ;;  %p1669_p6 = scmp.lt.u32.totalorder %s2184_s27, %s2510_s3 }
  0x9e   : > { %p1670_p8 = scmp.lt.u32.totalorder %s1668_s17, %s1664_s30  ;;  %p1672_p3 = scmp.lt.u32.totalorder %s1664_s30, %s2184_s27 }
  0x9f   : > { %p1666_p4 = pnand %p1665_p0, %p2555_p12 }
  0xa0   : > { %p1671_p9 = por %p1670_p8, %p1669_p6 }
  0xa1   : > { %p1667_p2 = pneg %p1666_p4 }
  0xa2   : > { %p1673_p7 = por %p1672_p3, %p1671_p9 }
  0xa4   : > { %p1674_p13 = pnand %p1673_p7, %p1667_p2 }
  0xa6   : > { %1677 = shalt.err (!%p1674_p13)
}
  0xa7   : > { %s1678_s4 = scalar_lea.vmem %s2187_s22, 2048  ;;  %s1873_s24 = smov [#allocation8]  }
  0xa8   : > { %p1679_p10 = scmp.ne.s32.totalorder %s2187_s22, %s1678_s4  ;;  %s1682_s15 = sshll.u32 %s1873_s24, 4  ;;  %s1683_s15 = int_to_ptr.vmem [resolvable:$false] %s1682_s15 }
  0xa9   : > { %s1684_s6 = scalar_lea.vmem %s1683_s15, 4096  ;;  %p1685_p1 = scmp.lt.s32.totalorder %s2187_s22, %s1683_s15 }
  0xaa   : > { %p1680_p5 = pnand %p1679_p10, %p2555_p12  ;;  %p1686_p0 = scmp.lt.s32.totalorder %s1684_s6, %s1678_s4 }
  0xac   : > { %p1681_p11 = pneg %p1680_p5  ;;  %p1687_p4 = por %p1686_p0, %p1685_p1 }
  0xae   : > { %p1688_p6 = pnand %p1687_p4, %p1681_p11 }
  0xb0   : > { %1691 = shalt.err (!%p1688_p6)
}
  0xb1   : > { %1390 = dma.hbm_to_vmem [thread:$0]  (%p2555_p12), %s2184_s27, 2048, %s2187_s22, %s2191_s14, %s1870_s13, %s1870_s13, %s1871_s29  }
  0xb2 PF: > { %p2556_p2 = scmp.ne.s32.totalorder %s2550_s19, 0 }
  0xb3   : > { %s406_s30 = sand.u32 (!%p2556_p2), 1, %s1834_s28   ;;  %p2557_p8 = scmp.ne.s32.totalorder (!%p2556_p2), %s2541_s20, 0 }
  0xb4   : > { %404 = sbr.rel (%p2556_p2) target bundleno = 507 (0x1fb), region = 44  ;;  %s1207_s21 = sshll.u32 (!%p2556_p2), %s406_s30, 8 }
  0xb5   : > { %s407_s16 = scalar_lea.sflag (!%p2556_p2), [#allocation3], %s406_s30  ;;  %s2221_s17 = scalar_lea.vmem (!%p2556_p2), [#allocation2], %s1207_s21 }
  0xbb   : > { %1793 = dma.done.wait (%p2557_p8), %s407_s16, 4096  }
  0xbc   : > { %1795 = vsyncadd (%p2557_p8), %s407_s16, 4294963200  ;;  %s415_s23 = sand.u32 1, %s1972_s12   ;;  %s2229_s13 = sand.u32 1, %s1822_s25  }
  0xbd   : > { %s2232_s19 = sshll.u32 %s2229_s13, 7  ;;  %s416_s29 = scalar_lea.sflag [#allocation6], %s415_s23 }
  0xbe   : > { %s2235_s27 = scalar_lea.vmem [#allocation5], %s2232_s19  ;;  %p2558_p12 = scmp.ne.s32.totalorder %s2545_s7, 0 }
  0xc0   : > { %1797 = dma.done.wait (%p2558_p12), %s416_s29, 4096  }
  0xc1   : > { %1799 = vsyncadd (%p2558_p12), %s416_s29, 4294963200  ;;  %s2242_s20 = scalar_lea.vmem [#allocation7], %s2232_s19  ;;  %s434_s22 = scalar_lea.sflag [#allocation9], %s415_s23 }
  0xc2   : > { %s2245_s14 = scalar_lea.vmem [#allocation8], %s2232_s19 }
  0xc3   : > { %1801 = dma.done.wait (%p2558_p12), %s434_s22, 2048  }
  0xc4   : > { %1803 = vsyncadd (%p2558_p12), %s434_s22, 4294965248  ;;  %p2559_p9 = scmp.eq.s32.totalorder %s1972_s12, 0 }
  0xc6   : > { %1805 = dma.done.wait (%p2559_p9), [#allocation9], 2048   ;;  %p2560_p3 = pmov %p2559_p9 }
  0xc7   : > { %v755_v0 = vld [vmem:[#allocation10] sm:$0xff]  ;;  %v756_v1 = vld [vmem:[#allocation10 + $0x8] sm:$0xff]  ;;  %v757_v2 = vld [vmem:[#allocation10 + $0x10] sm:$0xff]  ;;  %s2311_s7 = scalar_lea.vmem [#allocation11], %s2232_s19  ;;  %s2561_s12 = sld [smem:[#allocation25_spill]] }
  0xc8   : > { %1807 = vsyncadd (%p2560_p3), [#allocation9], 4294965248  ;;  %v1330_v3 = vpack.c.bf16 %v756_v1, %v755_v0  ;;  %v758_v4 = vld [vmem:[#allocation10 + $0x18] sm:$0xff]  ;;  %v759_v6 = vld [vmem:[#allocation10 + $0x20] sm:$0xff]  ;;  %s2562_s18 = sld [smem:[#allocation30_spill]]  ;;  %s1233_s5 = sshll.u32 %s1846_s8, 4 }
  0xc9   : > { %v1334_v5 = vpack.c.bf16 %v758_v4, %v757_v2  ;;  %v760_v7 = vld [vmem:[#allocation10 + $0x28] sm:$0xff]  ;;  %v498_v9 = vld [vmem:[%s2221_s17] sm:$0xff]  ;;  %v761_v11 = vld [vmem:[#allocation10 + $0x30] sm:$0xff]  ;;  %s960_s6 = sshll.u32 %s2311_s7, 4  ;;  %s2563_s16 = sld [smem:[#allocation34_spill]]  ;;  %s2382_s6 = int_to_ptr.vmem [resolvable:$true] %s960_s6 }
  0xca   : > { %1331 = vmatprep.subr.bf16.mxu0 %v1330_v3  ;;  %1362 = vmatprep.subr.bf16.mxu1 %v1330_v3  ;;  %v1338_v8 = vpack.c.bf16 %v760_v7, %v759_v6  ;;  %v1214_v10 = vld [vmem:[%s2221_s17 + $0x80] sm:$0xff]  ;;  %v762_v12 = vld [vmem:[#allocation10 + $0x38] sm:$0xff]  ;;  %v499_v18 = vld [vmem:[%s2221_s17 + $0x8] sm:$0xff]  ;;  %s940_s23 = scalar_lea.sflag [#allocation4], %s2229_s13  ;;  %s1692_s8 = scalar_lea.vmem %s2382_s6, 2048 }
  0xcb   : > { %1333 = vmatpush3.bf16.msra.mxu0 %v1330_v3  ;;  %1370 = vmatpush3.bf16.msra.mxu1 %v1330_v3  ;;  %v531_v13 = vsub.f32 %v1214_v10, %v498_v9  ;;  %v506_v14 = vld [vmem:[%s2221_s17 + $0x40] sm:$0xff]  ;;  %v1342_v19 = vpack.c.bf16 %v762_v12, %v761_v11  ;;  %v1215_v21 = vld [vmem:[%s2221_s17 + $0x88] sm:$0xff]  ;;  %v500_v29 = vld [vmem:[%s2221_s17 + $0x10] sm:$0xff]  ;;  %p1693_p7 = scmp.ne.s32.totalorder %s2382_s6, %s1692_s8  ;;  %s1874_s29 = smov [#allocation11]  }
  0xcc   : > { %1335 = vmatprep.subr.bf16.mxu0 %v1334_v5  ;;  %1363 = vmatprep.subr.bf16.mxu1 %v1334_v5  ;;  %v1222_v15 = vld [vmem:[%s2221_s17 + $0xc0] sm:$0xff]  ;;  %v764_v22 = vld [vmem:[#allocation10 + $0x48] sm:$0xff]  ;;  %v532_v24 = vsub.f32 %v1215_v21, %v499_v18  ;;  %v1216_v30 = vld [vmem:[%s2221_s17 + $0x90] sm:$0xff] }
  0xcd   : > { %v547_v16 = vmul.f32 1.442695, %v531_v13  ;;  %v539_v17 = vsub.f32 %v1222_v15, %v506_v14  ;;  %v763_v20 = vld [vmem:[#allocation10 + $0x40] sm:$0xff]  ;;  %v507_v25 = vld [vmem:[%s2221_s17 + $0x48] sm:$0xff]  ;;  %v533_v33 = vsub.f32 %v1216_v30, %v500_v29  ;;  %v508_v34 = vld [vmem:[%s2221_s17 + $0x50] sm:$0xff]  ;;  %s1234_s4 = sshll.u32 %s2561_s12, 5 }
  0xce   : > { %v1223_v26 = vld [vmem:[%s2221_s17 + $0xc8] sm:$0xff]  ;;  %v549_v28 = vmul.f32 1.442695, %v532_v24  ;;  %v1346_v31 = vpack.c.bf16 %v764_v22, %v763_v20  ;;  %v765_v35 = vld [vmem:[#allocation10 + $0x50] sm:$0xff]  ;;  %v766_v36 = vld [vmem:[#allocation10 + $0x58] sm:$0xff]  ;;  %s2371_s24 = sadd.s32 %s1234_s4, %s1233_s5  ;;  %p2564_p13 = scmp.ne.s32.totalorder %s2562_s18, 0 }
  0xcf   : > { %1337 = vmatpush3.bf16.msra.mxu0 %v1334_v5  ;;  %1371 = vmatpush3.bf16.msra.mxu1 %v1334_v5  ;;  %1516 = vpow2.f32 %v547_v16  ;;  %v563_v23 = vmul.f32 1.442695, %v539_v17  ;;  %v540_v27 = vsub.f32 %v1223_v26, %v507_v25  ;;  %v1224_v37 = vld [vmem:[%s2221_s17 + $0xd0] sm:$0xff]  ;;  %v551_v38 = vmul.f32 1.442695, %v533_v33  ;;  %v501_v40 = vld [vmem:[%s2221_s17 + $0x18] sm:$0xff] }
  0xd0   : > { %1339 = vmatprep.subr.bf16.mxu0 %v1338_v8  ;;  %1364 = vmatprep.subr.bf16.mxu1 %v1338_v8  ;;  %v541_v39 = vsub.f32 %v1224_v37, %v508_v34  ;;  %v1217_v41 = vld [vmem:[%s2221_s17 + $0x98] sm:$0xff]  ;;  %v1350_v43 = vpack.c.bf16 %v766_v36, %v765_v35  ;;  %v767_v47 = vld [vmem:[#allocation10 + $0x60] sm:$0xff]  ;;  %v768_v48 = vld [vmem:[#allocation10 + $0x68] sm:$0xff]  ;;  %s1235_s15 = sshll.u32 %s2371_s24, 7  ;;  %p1694_p10 = pnand %p1693_p7, %p2564_p13 }
  0xd1   : > { %1518 = vpow2.f32 %v563_v23  ;;  %v565_v32 = vmul.f32 1.442695, %v540_v27  ;;  %v534_v42 = vsub.f32 %v1217_v41, %v501_v40  ;;  %v509_v45 = vld [vmem:[%s2221_s17 + $0x58] sm:$0xff]  ;;  %v502_v51 = vld [vmem:[%s2221_s17 + $0x20] sm:$0xff]  ;;  %v1354_v58 = vpack.c.bf16 %v768_v48, %v767_v47  ;;  %v769_v59 = vld [vmem:[#allocation10 + $0x70] sm:$0xff] }
  0xd2   : > { %1520 = vpow2.f32 %v549_v28  ;;  %v567_v44 = vmul.f32 1.442695, %v541_v39  ;;  %v1225_v46 = vld [vmem:[%s2221_s17 + $0xd8] sm:$0xff]  ;;  %v1218_v52 = vld [vmem:[%s2221_s17 + $0xa0] sm:$0xff]  ;;  %v503_v1 = vld [vmem:[%s2221_s17 + $0x28] sm:$0xff]  ;;  %p1695_p5 = pneg %p1694_p10 }
  0xd3   : > { %1341 = vmatpush3.bf16.msra.mxu0 %v1338_v8  ;;  %1372 = vmatpush3.bf16.msra.mxu1 %v1338_v8  ;;  %1522 = vpow2.f32 %v565_v32  ;;  %v553_v49 = vmul.f32 1.442695, %v534_v42  ;;  %v542_v50 = vsub.f32 %v1225_v46, %v509_v45  ;;  %v535_v55 = vsub.f32 %v1218_v52, %v502_v51  ;;  %v510_v56 = vld [vmem:[%s2221_s17 + $0x60] sm:$0xff]  ;;  %v770_v60 = vld [vmem:[#allocation10 + $0x78] sm:$0xff]  ;;  %v1219_v2 = vld [vmem:[%s2221_s17 + $0xa8] sm:$0xff] }
  0xd4   : > { %1343 = vmatprep.subr.bf16.mxu0 %v1342_v19  ;;  %1365 = vmatprep.subr.bf16.mxu1 %v1342_v19  ;;  %1524 = vpow2.f32 %v551_v38  ;;  %v1226_v57 = vld [vmem:[%s2221_s17 + $0xe0] sm:$0xff]  ;;  %v536_v5 = vsub.f32 %v1219_v2, %v503_v1  ;;  %v511_v6 = vld [vmem:[%s2221_s17 + $0x68] sm:$0xff]  ;;  %v1358_v8 = vpack.c.bf16 %v770_v60, %v769_v59  ;;  %v504_v14 = vld [vmem:[%s2221_s17 + $0x30] sm:$0xff] }
  0xd5   : > { %1526 = vpow2.f32 %v567_v44  ;;  %v569_v54 = vmul.f32 1.442695, %v542_v50  ;;  %v543_v62 = vsub.f32 %v1226_v57, %v510_v56  ;;  %v555_v0 = vmul.f32 1.442695, %v535_v55  ;;  %v1227_v9 = vld [vmem:[%s2221_s17 + $0xe8] sm:$0xff]  ;;  %v1220_v15 = vld [vmem:[%s2221_s17 + $0xb0] sm:$0xff] }
  0xd6   : > { %1528 = vpow2.f32 %v553_v49  ;;  %v557_v12 = vmul.f32 1.442695, %v536_v5  ;;  %v544_v13 = vsub.f32 %v1227_v9, %v511_v6  ;;  %v537_v17 = vsub.f32 %v1220_v15, %v504_v14  ;;  %v512_v21 = vld [vmem:[%s2221_s17 + $0x70] sm:$0xff]  ;;  %v643_v27 = vld [vmem:[%s2242_s20] sm:$0xff]  ;;  %v2288_v39 = vld [vmem:[%s2221_s17 + $0x38] sm:$0xff] }
  0xd7   : > { %1345 = vmatpush3.bf16.msra.mxu0 %v1342_v19  ;;  %1373 = vmatpush3.bf16.msra.mxu1 %v1342_v19  ;;  %1530 = vpow2.f32 %v569_v54  ;;  %v571_v4 = vmul.f32 1.442695, %v543_v62  ;;  %v1228_v22 = vld [vmem:[%s2221_s17 + $0xf0] sm:$0xff]  ;;  %v627_v32 = vld [vmem:[%s2235_s27] sm:$0xff]  ;;  %v2291_v40 = vld [vmem:[%s2221_s17 + $0xb8] sm:$0xff] }
  0xd8   : > { %1347 = vmatprep.subr.bf16.mxu0 %v1346_v31  ;;  %1366 = vmatprep.subr.bf16.mxu1 %v1346_v31  ;;  %v573_v19 = vmul.f32 1.442695, %v544_v13  ;;  %v559_v26 = vmul.f32 1.442695, %v537_v17  ;;  %v545_v29 = vsub.f32 %v1228_v22, %v512_v21  ;;  %v691_v33 = vld [vmem:[%s2245_s14] sm:$0xff]  ;;  %v644_v51 = vld [vmem:[%s2242_s20 + $0x8] sm:$0xff]  ;;  %v538_v56 = vsub.f32 %v2291_v40, %v2288_v39 }
  0xd9   : > { %v1517_v53 = vpop.eup %1516  ;;  %v651_v34 = vld [vmem:[%s2242_s20 + $0x40] sm:$0xff]  ;;  %v652_v52 = vld [vmem:[%s2242_s20 + $0x48] sm:$0xff]  ;;  %v645_v5 = vld [vmem:[%s2242_s20 + $0x10] sm:$0xff] }
  0xda   : > { %v579_v61 = vadd.f32 1.0, %v1517_v53  ;;  %v635_v42 = vld [vmem:[%s2235_s27 + $0x40] sm:$0xff]  ;;  %v575_v45 = vmul.f32 1.442695, %v545_v29  ;;  %v692_v54 = vld [vmem:[%s2245_s14 + $0x8] sm:$0xff]  ;;  %v2305_v6 = vld [vmem:[%s2221_s17 + $0x78] sm:$0xff] }
  0xdb   : > { %1349 = vmatpush3.bf16.msra.mxu0 %v1346_v31  ;;  %1374 = vmatpush3.bf16.msra.mxu1 %v1346_v31  ;;  %v1519_v63 = vpop.eup %1518  ;;  %v628_v62 = vld [vmem:[%s2235_s27 + $0x8] sm:$0xff] }
  0xdc   : > { %1351 = vmatprep.subr.bf16.mxu0 %v1350_v43  ;;  %1367 = vmatprep.subr.bf16.mxu1 %v1350_v43  ;;  %1532 = vrcp.f32 %v579_v61  ;;  %v587_v3 = vadd.f32 1.0, %v1519_v63  ;;  %v1521_v7 = vpop.eup %1520  ;;  %v636_v63 = vld [vmem:[%s2235_s27 + $0x48] sm:$0xff] }
  0xdd   : > { %1534 = vpow2.f32 %v555_v0  ;;  %v1523_v10 = vpop.eup %1522  ;;  %v580_v11 = vadd.f32 1.0, %v1521_v7  ;;  %v700_v0 = vld [vmem:[%s2245_s14 + $0x48] sm:$0xff]  ;;  %v2308_v7 = vld [vmem:[%s2221_s17 + $0xf8] sm:$0xff]  ;;  %s2380_s17 = scalar_lea.hbm %s2563_s16, %s1235_s15 }
  0xde   : > { %1536 = vrcp.f32 %v587_v3  ;;  %v588_v16 = vadd.f32 1.0, %v1523_v10  ;;  %v1525_v18 = vpop.eup %1524 }
  0xdf   : > { %1353 = vmatpush3.bf16.msra.mxu0 %v1350_v43  ;;  %1375 = vmatpush3.bf16.msra.mxu1 %v1350_v43  ;;  %1538 = vpow2.f32 %v571_v4  ;;  %v581_v20 = vadd.f32 1.0, %v1525_v18  ;;  %v1527_v23 = vpop.eup %1526  ;;  %v699_v43 = vld [vmem:[%s2245_s14 + $0x40] sm:$0xff]  ;;  %v629_v18 = vld [vmem:[%s2235_s27 + $0x10] sm:$0xff] }
  0xe0   : > { %1355 = vmatprep.subr.bf16.mxu0 %v1354_v58  ;;  %1368 = vmatprep.subr.bf16.mxu1 %v1354_v58  ;;  %1540 = vrcp.f32 %v580_v11  ;;  %v1529_v24 = vpop.eup %1528  ;;  %v589_v25 = vadd.f32 1.0, %v1527_v23  ;;  %v693_v11 = vld [vmem:[%s2245_s14 + $0x10] sm:$0xff] }
  0xe1   : > { %1542 = vrcp.f32 %v588_v16  ;;  %v582_v28 = vadd.f32 1.0, %v1529_v24  ;;  %v1531_v30 = vpop.eup %1530  ;;  %v701_v23 = vld [vmem:[%s2245_s14 + $0x50] sm:$0xff] }
  0xe2   : > { %1544 = vpow2.f32 %v557_v12  ;;  %v590_v35 = vadd.f32 1.0, %v1531_v30 }
  0xe3   : > { %1357 = vmatpush3.bf16.msra.mxu0 %v1354_v58  ;;  %1376 = vmatpush3.bf16.msra.mxu1 %v1354_v58  ;;  %1546 = vrcp.f32 %v581_v20  ;;  %v646_v20 = vld [vmem:[%s2242_s20 + $0x18] sm:$0xff] }
  0xe4   : > { %1359 = vmatprep.subr.bf16.mxu0 %v1358_v8  ;;  %1369 = vmatprep.subr.bf16.mxu1 %v1358_v8  ;;  %1548 = vpow2.f32 %v573_v19  ;;  %v653_v19 = vld [vmem:[%s2242_s20 + $0x50] sm:$0xff] }
  0xe5   : > { %1550 = vrcp.f32 %v589_v25  ;;  %v546_v25 = vsub.f32 %v2308_v7, %v2305_v6 }
  0xe6   : > { %v1533_v31 = vpop.eup %1532  ;;  %1552 = vrcp.f32 %v582_v28 }
  0xe7   : > { %1361 = vmatpush3.bf16.msra.mxu0 %v1358_v8  ;;  %1377 = vmatpush3.bf16.msra.mxu1 %v1358_v8  ;;  %v1535_v36 = vpop.eup %1534  ;;  %v611_v37 = vsub.f32 1.0, %v1533_v31  ;;  %v659_v38 = vmul.f32 %v1533_v31, %v643_v27  ;;  %1554 = vpow2.f32 %v559_v26  ;;  %v637_v31 = vld [vmem:[%s2235_s27 + $0x50] sm:$0xff] }
  0xe8   : > { %v1537_v41 = vpop.eup %1536  ;;  %1556 = vrcp.f32 %v590_v35  ;;  %v583_v44 = vadd.f32 1.0, %v1535_v36 }
  0xe9   : > { %v1539_v46 = vpop.eup %1538  ;;  %v675_v47 = vadd.f32 %v659_v38, %v627_v32  ;;  %v707_v48 = vmul.f32 %v691_v33, %v611_v37  ;;  %v619_v49 = vsub.f32 1.0, %v1537_v41  ;;  %v667_v50 = vmul.f32 %v1537_v41, %v651_v34  ;;  %v630_v32 = vld [vmem:[%s2235_s27 + $0x18] sm:$0xff] }
  0xea   : > { %v1541_v53 = vpop.eup %1540  ;;  %1558 = vrcp.f32 %v583_v44  ;;  %v591_v55 = vadd.f32 1.0, %v1539_v46  ;;  %v694_v33 = vld [vmem:[%s2245_s14 + $0x18] sm:$0xff]  ;;  %v647_v44 = vld [vmem:[%s2242_s20 + $0x20] sm:$0xff]  ;;  %v561_v46 = vmul.f32 1.442695, %v538_v56 }
  0xeb   : > { %v1543_v57 = vpop.eup %1542  ;;  %v723_v58 = vadd.f32 %v707_v48, %v675_v47  ;;  %v683_v59 = vadd.f32 %v667_v50, %v635_v42  ;;  %v715_v60 = vmul.f32 %v699_v43, %v619_v49  ;;  %v612_v61 = vsub.f32 1.0, %v1541_v53  ;;  %v654_v41 = vld [vmem:[%s2242_s20 + $0x58] sm:$0xff] }
  0xec   : > { %v1545_v1 = vpop.eup %1544  ;;  %v660_v2 = vmul.f32 %v1541_v53, %v644_v51  ;;  %v620_v3 = vsub.f32 1.0, %v1543_v57  ;;  %v668_v4 = vmul.f32 %v1543_v57, %v652_v52  ;;  %1560 = vrcp.f32 %v591_v55  ;;  %v638_v51 = vld [vmem:[%s2235_s27 + $0x58] sm:$0xff]  ;;  %v631_v57 = vld [vmem:[%s2235_s27 + $0x20] sm:$0xff] }
  0xed   : > { %v1547_v8 = vpop.eup %1546  ;;  %739 = vst [vmem:[%s2311_s7] sm:$0xff] %v723_v58  ;;  %1306 = vmatprep.mubr.f32.mxu0 %v723_v58  ;;  %v731_v9 = vadd.f32 %v715_v60, %v683_v59  ;;  %v708_v10 = vmul.f32 %v692_v54, %v612_v61  ;;  %v584_v12 = vadd.f32 1.0, %v1545_v1  ;;  %1562 = vpow2.f32 %v575_v45  ;;  %v702_v52 = vld [vmem:[%s2245_s14 + $0x58] sm:$0xff]  ;;  %v695_v58 = vld [vmem:[%s2245_s14 + $0x20] sm:$0xff] }
  0xee   : > { %v1549_v13 = vpop.eup %1548  ;;  %v676_v14 = vadd.f32 %v660_v2, %v628_v62  ;;  %v684_v15 = vadd.f32 %v668_v4, %v636_v63  ;;  %v716_v16 = vmul.f32 %v700_v0, %v620_v3  ;;  %v613_v17 = vsub.f32 1.0, %v1547_v8  ;;  %v655_v59 = vld [vmem:[%s2242_s20 + $0x60] sm:$0xff] }
  0xef   : > { %v1551_v21 = vpop.eup %1550  ;;  %747 = vst [vmem:[%s2311_s7 + $0x40] sm:$0xff] %v731_v9  ;;  %1318 = vmatprep.mubr.f32.mxu1 %v731_v9  ;;  %v661_v22 = vmul.f32 %v1547_v8, %v645_v5  ;;  %1564 = vrcp.f32 %v584_v12  ;;  %v592_v24 = vadd.f32 1.0, %v1549_v13  ;;  %v577_v60 = vmul.f32 1.442695, %v546_v25  ;;  %v639_v1 = vld [vmem:[%s2235_s27 + $0x60] sm:$0xff]  ;;  %v648_v8 = vld [vmem:[%s2242_s20 + $0x28] sm:$0xff] }
  0xf0   : > { %v1553_v26 = vpop.eup %1552  ;;  %v724_v27 = vadd.f32 %v708_v10, %v676_v14  ;;  %v732_v28 = vadd.f32 %v716_v16, %v684_v15  ;;  %v709_v29 = vmul.f32 %v693_v11, %v613_v17  ;;  %v621_v30 = vsub.f32 1.0, %v1551_v21  ;;  %v703_v2 = vld [vmem:[%s2245_s14 + $0x60] sm:$0xff]  ;;  %v632_v15 = vld [vmem:[%s2235_s27 + $0x28] sm:$0xff] }
  0xf1   : > { %v1555_v34 = vpop.eup %1554  ;;  %v677_v35 = vadd.f32 %v661_v22, %v629_v18  ;;  %v669_v36 = vmul.f32 %v1551_v21, %v653_v19  ;;  %v614_v37 = vsub.f32 1.0, %v1553_v26  ;;  %v662_v38 = vmul.f32 %v1553_v26, %v646_v20  ;;  %v696_v16 = vld [vmem:[%s2245_s14 + $0x28] sm:$0xff]  ;;  %v649_v26 = vld [vmem:[%s2242_s20 + $0x30] sm:$0xff] }
  0xf2   : > { %v1557_v42 = vpop.eup %1556  ;;  %740 = vst [vmem:[%s2311_s7 + $0x8] sm:$0xff] %v724_v27  ;;  %1307 = vmatmul.mubr.f32.vlgmr.msra.gmra.mrb[0].mxu0 %v724_v27  ;;  %748 = vst [vmem:[%s2311_s7 + $0x48] sm:$0xff] %v732_v28  ;;  %1319 = vmatmul.mubr.f32.vlgmr.msra.gmra.mrb[0].mxu1 %v732_v28  ;;  %v717_v43 = vmul.f32 %v701_v23, %v621_v30  ;;  %1566 = vrcp.f32 %v592_v24  ;;  %v585_v45 = vadd.f32 1.0, %v1555_v34  ;;  %v656_v19 = vld [vmem:[%s2242_s20 + $0x68] sm:$0xff] }
  0xf3   : > { %v725_v47 = vadd.f32 %v709_v29, %v677_v35  ;;  %v685_v48 = vadd.f32 %v669_v36, %v637_v31  ;;  %v678_v49 = vadd.f32 %v662_v38, %v630_v32  ;;  %v710_v50 = vmul.f32 %v694_v33, %v614_v37  ;;  %v640_v24 = vld [vmem:[%s2235_s27 + $0x68] sm:$0xff]  ;;  %v633_v31 = vld [vmem:[%s2235_s27 + $0x30] sm:$0xff] }
  0xf4   : > { %v1559_v53 = vpop.eup %1558  ;;  %v622_v54 = vsub.f32 1.0, %v1557_v42  ;;  %v670_v55 = vmul.f32 %v1557_v42, %v654_v41  ;;  %1568 = vrcp.f32 %v585_v45  ;;  %v704_v25 = vld [vmem:[%s2245_s14 + $0x68] sm:$0xff]  ;;  %v697_v32 = vld [vmem:[%s2245_s14 + $0x30] sm:$0xff] }
  0xf5   : > { %741 = vst [vmem:[%s2311_s7 + $0x10] sm:$0xff] %v725_v47  ;;  %1309 = vmatprep.mubr.f32.mxu0 %v725_v47  ;;  %v733_v39 = vadd.f32 %v717_v43, %v685_v48  ;;  %v726_v40 = vadd.f32 %v710_v50, %v678_v49  ;;  %v615_v56 = vsub.f32 1.0, %v1559_v53  ;;  %v663_v61 = vmul.f32 %v1559_v53, %v647_v44  ;;  %v657_v45 = vld [vmem:[%s2242_s20 + $0x70] sm:$0xff] }
  0xf6   : > { %v1561_v62 = vpop.eup %1560  ;;  %v686_v63 = vadd.f32 %v670_v55, %v638_v51  ;;  %v718_v0 = vmul.f32 %v702_v52, %v622_v54  ;;  %1570 = vpow2.f32 %v561_v46  ;;  %v641_v49 = vld [vmem:[%s2235_s27 + $0x70] sm:$0xff] }
  0xf7   : > { %v1563_v3 = vpop.eup %1562  ;;  %749 = vst [vmem:[%s2311_s7 + $0x50] sm:$0xff] %v733_v39  ;;  %1321 = vmatprep.mubr.f32.mxu1 %v733_v39  ;;  %742 = vst [vmem:[%s2311_s7 + $0x18] sm:$0xff] %v726_v40  ;;  %1310 = vmatmul.mubr.f32.gmra.mrb[2].mxu0 %v726_v40  ;;  %v679_v4 = vadd.f32 %v663_v61, %v631_v57  ;;  %v711_v5 = vmul.f32 %v695_v58, %v615_v56  ;;  %v623_v6 = vsub.f32 1.0, %v1561_v62  ;;  %v705_v50 = vld [vmem:[%s2245_s14 + $0x70] sm:$0xff]  ;;  %v650_v57 = vld [vmem:[%s2242_s20 + $0x38] sm:$0xff] }
  0xf8   : > { %v671_v7 = vmul.f32 %v1561_v62, %v655_v59  ;;  %v734_v9 = vadd.f32 %v718_v0, %v686_v63  ;;  %v593_v10 = vadd.f32 1.0, %v1563_v3  ;;  %1572 = vpow2.f32 %v577_v60  ;;  %v634_v59 = vld [vmem:[%s2235_s27 + $0x38] sm:$0xff] }
  0xf9   : > { %v1565_v11 = vpop.eup %1564  ;;  %v727_v12 = vadd.f32 %v711_v5, %v679_v4  ;;  %v719_v14 = vmul.f32 %v703_v2, %v623_v6  ;;  %v698_v60 = vld [vmem:[%s2245_s14 + $0x38] sm:$0xff] }
  0xfa   : > { %v687_v13 = vadd.f32 %v671_v7, %v639_v1  ;;  %750 = vst [vmem:[%s2311_s7 + $0x58] sm:$0xff] %v734_v9  ;;  %1322 = vmatmul.mubr.f32.gmra.mrb[2].mxu1 %v734_v9  ;;  %v616_v17 = vsub.f32 1.0, %v1565_v11  ;;  %v664_v18 = vmul.f32 %v1565_v11, %v648_v8  ;;  %1574 = vrcp.f32 %v593_v10  ;;  %v658_v39 = vld [vmem:[%s2242_s20 + $0x78] sm:$0xff] }
  0xfb   : > { %743 = vst [vmem:[%s2311_s7 + $0x20] sm:$0xff] %v727_v12  ;;  %1312 = vmatprep.mubr.f32.mxu0 %v727_v12  ;;  %v642_v62 = vld [vmem:[%s2235_s27 + $0x78] sm:$0xff]  ;;  %s1696_s27 = sshll.u32 %s1874_s29, 4  ;;  %s1697_s27 = int_to_ptr.vmem [resolvable:$false] %s1696_s27 }
  0xfc   : > { %v735_v20 = vadd.f32 %v719_v14, %v687_v13  ;;  %v1567_v21 = vpop.eup %1566  ;;  %v680_v22 = vadd.f32 %v664_v18, %v632_v15  ;;  %v712_v23 = vmul.f32 %v696_v16, %v616_v17  ;;  %v706_v63 = vld [vmem:[%s2245_s14 + $0x78] sm:$0xff]  ;;  %s1698_s20 = scalar_lea.vmem %s1697_s27, 4096  ;;  %p1699_p11 = scmp.lt.s32.totalorder %s2382_s6, %s1697_s27 }
  0xfd   : > { %v624_v27 = vsub.f32 1.0, %v1567_v21  ;;  %v672_v28 = vmul.f32 %v1567_v21, %v656_v19  ;;  %p1700_p1 = scmp.lt.s32.totalorder %s1698_s20, %s1692_s8 }
  0xfe   : > { %751 = vst [vmem:[%s2311_s7 + $0x60] sm:$0xff] %v735_v20  ;;  %1324 = vmatprep.mubr.f32.mxu1 %v735_v20  ;;  %v1569_v29 = vpop.eup %1568  ;;  %v728_v30 = vadd.f32 %v712_v23, %v680_v22 }
  0xff   : > { %v688_v33 = vadd.f32 %v672_v28, %v640_v24  ;;  %v720_v34 = vmul.f32 %v704_v25, %v624_v27  ;;  %v617_v35 = vsub.f32 1.0, %v1569_v29  ;;  %v665_v36 = vmul.f32 %v1569_v29, %v649_v26  ;;  %p1701_p0 = por %p1700_p1, %p1699_p11 }
 0x100   : > { %v1571_v37 = vpop.eup %1570  ;;  %744 = vst [vmem:[%s2311_s7 + $0x28] sm:$0xff] %v728_v30  ;;  %1313 = vmatmul.mubr.f32.gmra.mrb[4].mxu0 %v728_v30 }
 0x101   : > { %v736_v38 = vadd.f32 %v720_v34, %v688_v33  ;;  %v681_v41 = vadd.f32 %v665_v36, %v633_v31  ;;  %v713_v42 = vmul.f32 %v697_v32, %v617_v35  ;;  %v586_v43 = vadd.f32 1.0, %v1571_v37  ;;  %p1702_p4 = pnand %p1701_p0, %p1695_p5 }
 0x102   : > { %v1573_v44 = vpop.eup %1572 }
 0x103   : > { %752 = vst [vmem:[%s2311_s7 + $0x68] sm:$0xff] %v736_v38  ;;  %1325 = vmatmul.mubr.f32.gmra.mrb[4].mxu1 %v736_v38  ;;  %v729_v46 = vadd.f32 %v713_v42, %v681_v41  ;;  %1576 = vrcp.f32 %v586_v43  ;;  %v594_v47 = vadd.f32 1.0, %v1573_v44 }
 0x104   : > { %v1575_v48 = vpop.eup %1574 }
 0x105   : > { %745 = vst [vmem:[%s2311_s7 + $0x30] sm:$0xff] %v729_v46  ;;  %1315 = vmatprep.mubr.f32.mxu0 %v729_v46  ;;  %v625_v51 = vsub.f32 1.0, %v1575_v48  ;;  %v673_v52 = vmul.f32 %v1575_v48, %v657_v45  ;;  %1578 = vrcp.f32 %v594_v47 }
 0x107   : > { %v689_v53 = vadd.f32 %v673_v52, %v641_v49  ;;  %v721_v54 = vmul.f32 %v705_v50, %v625_v51 }
 0x109   : > { %v737_v55 = vadd.f32 %v721_v54, %v689_v53 }
 0x10b   : > { %753 = vst [vmem:[%s2311_s7 + $0x70] sm:$0xff] %v737_v55  ;;  %1327 = vmatprep.mubr.f32.mxu1 %v737_v55 }
 0x10d   : > { %v1577_v58 = vpop.eup %1576 }
 0x10e   : > { %v618_v40 = vsub.f32 1.0, %v1577_v58  ;;  %v666_v56 = vmul.f32 %v1577_v58, %v650_v57 }
 0x10f   : > { %v1579_v61 = vpop.eup %1578 }
 0x110   : > { %v682_v0 = vadd.f32 %v666_v56, %v634_v59  ;;  %v714_v1 = vmul.f32 %v698_v60, %v618_v40  ;;  %v626_v2 = vsub.f32 1.0, %v1579_v61  ;;  %v674_v3 = vmul.f32 %v1579_v61, %v658_v39 }
 0x112   : > { %v730_v4 = vadd.f32 %v714_v1, %v682_v0  ;;  %v690_v5 = vadd.f32 %v674_v3, %v642_v62  ;;  %v722_v6 = vmul.f32 %v706_v63, %v626_v2 }
 0x114   : > { %746 = vst [vmem:[%s2311_s7 + $0x38] sm:$0xff] %v730_v4  ;;  %1316 = vmatmul.mubr.f32.gmra.mrb[6].mxu0 %v730_v4  ;;  %v738_v7 = vadd.f32 %v722_v6, %v690_v5 }
 0x116   : > { %754 = vst [vmem:[%s2311_s7 + $0x78] sm:$0xff] %v738_v7  ;;  %1328 = vmatmul.mubr.f32.gmra.mrb[6].mxu1 %v738_v7 }
 0x117   : > { %1705 = shalt.err (!%p1702_p4)
}
 0x118   : > { %s1706_s22 = scalar_lea.hbm %s2380_s17, 2048  ;;  %s1710_s12 = scalar_lea.hbm %s2563_s16, 8192 }
 0x119   : > { %p1707_p6 = scmp.ne.s32.totalorder %s2380_s17, %s1706_s22  ;;  %p1711_p12 = scmp.lt.u32.totalorder %s2380_s17, %s2563_s16 }
 0x11a   : > { %p1712_p9 = scmp.lt.u32.totalorder %s1710_s12, %s1706_s22  ;;  %p1714_p7 = scmp.lt.u32.totalorder %s1706_s22, %s2380_s17 }
 0x11b   : > { %p1708_p2 = pnand %p1707_p6, %p2564_p13 }
 0x11c   : > { %p1713_p3 = por %p1712_p9, %p1711_p12 }
 0x11d   : > { %p1709_p8 = pneg %p1708_p2 }
 0x11e   : > { %p1715_p10 = por %p1714_p7, %p1713_p3 }
 0x120   : > { %p1716_p5 = pnand %p1715_p10, %p1709_p8 }
 0x122   : > { %1719 = shalt.err (!%p1716_p5)
}
 0x123   : > { %s1875_s30 = smov 128   ;;  %s1876_s21 = smov 8  }
 0x124   : > { %1397 = dma.vmem_to_hbm [thread:$0]  (%p2564_p13), %s2382_s6, 2048, %s2380_s17, %s940_s23, %s1875_s30, %s1875_s30, %s1876_s21  }
 0x125   : > { %s2565_s27 = sld [smem:[#allocation33_spill]]  ;;  %s2415_s20 = scalar_lea.vmem [#allocation12], %s2232_s19 }
 0x126   : > { %s978_s19 = sshll.u32 %s2415_s20, 4  ;;  %s2566_s23 = sld [smem:[#allocation35_spill]]  ;;  %s2439_s19 = int_to_ptr.vmem [resolvable:$true] %s978_s19 }
 0x127   : > { %s945_s14 = scalar_lea.sflag [#allocation13], %s2229_s13  ;;  %s1720_s7 = scalar_lea.vmem %s2439_s19, 2048 }
 0x128   : > { %p1721_p11 = scmp.ne.s32.totalorder %s2439_s19, %s1720_s7  ;;  %s1877_s12 = smov [#allocation12]  }
 0x129   : > { %s1724_s24 = sshll.u32 %s1877_s12, 4  ;;  %s1725_s24 = int_to_ptr.vmem [resolvable:$false] %s1724_s24 }
 0x12a   : > { %p1722_p1 = pnand %p1721_p11, %p2564_p13  ;;  %s1726_s5 = scalar_lea.vmem %s1725_s24, 4096 }
 0x12b   : > { %v1230_v8 = vld [vmem:[%s2565_s27] ss:$0 sm:$0xff]  ;;  %p1727_p4 = scmp.lt.s32.totalorder %s2439_s19, %s1725_s24  ;;  %p1728_p6 = scmp.lt.s32.totalorder %s1726_s5, %s1720_s7 }
 0x12c   : > { %s2437_s22 = scalar_lea.hbm %s2566_s23, %s1235_s15  ;;  %p1723_p0 = pneg %p1722_p1 }
 0x12d   : > { %p1729_p2 = por %p1728_p6, %p1727_p4 }
 0x12f   : > { %p1730_p8 = pnand %p1729_p2, %p1723_p0 }
 0x1c5   : > { %v1308_v9 = vpop.f32.mrb[0].mxu0  ;;  %v1320_v10 = vpop.f32.mrb[0].mxu1 }
 0x1c6   : > { %v850_v11 = vadd.f32 %v1308_v9, %v1230_v8  ;;  %v890_v12 = vadd.f32 %v1320_v10, %v1230_v8  ;;  %v844_v13 = vpop.f32.mrb[1].mxu0  ;;  %v884_v14 = vpop.f32.mrb[1].mxu1 }
 0x1c7   : > { %v845_v15 = vadd.f32 %v1230_v8, %v844_v13  ;;  %v885_v16 = vadd.f32 %v1230_v8, %v884_v14 }
 0x1c8   : > { %924 = vst [vmem:[%s2415_s20 + $0x8] sm:$0xff] %v850_v11  ;;  %932 = vst [vmem:[%s2415_s20 + $0x48] sm:$0xff] %v890_v12 }
 0x1c9   : > { %923 = vst [vmem:[%s2415_s20] sm:$0xff] %v845_v15  ;;  %931 = vst [vmem:[%s2415_s20 + $0x40] sm:$0xff] %v885_v16 }
 0x1ca   : > { %v1311_v17 = vpop.f32.mrb[2].mxu0 }
 0x1cb   : > { %v860_v18 = vadd.f32 %v1311_v17, %v1230_v8  ;;  %v854_v19 = vpop.f32.mrb[3].mxu0 }
 0x1cc   : > { %v855_v20 = vadd.f32 %v1230_v8, %v854_v19 }
 0x1cd   : > { %926 = vst [vmem:[%s2415_s20 + $0x18] sm:$0xff] %v860_v18  ;;  %v1323_v21 = vpop.f32.mrb[2].mxu1 }
 0x1ce   : > { %v900_v22 = vadd.f32 %v1323_v21, %v1230_v8  ;;  %925 = vst [vmem:[%s2415_s20 + $0x10] sm:$0xff] %v855_v20  ;;  %v894_v23 = vpop.f32.mrb[3].mxu1 }
 0x1cf   : > { %v895_v24 = vadd.f32 %v1230_v8, %v894_v23 }
 0x1d0   : > { %934 = vst [vmem:[%s2415_s20 + $0x58] sm:$0xff] %v900_v22 }
 0x1d1   : > { %933 = vst [vmem:[%s2415_s20 + $0x50] sm:$0xff] %v895_v24 }
 0x1d3   : > { %v1314_v25 = vpop.f32.mrb[4].mxu0 }
 0x1d4   : > { %v870_v26 = vadd.f32 %v1314_v25, %v1230_v8  ;;  %v864_v27 = vpop.f32.mrb[5].mxu0 }
 0x1d5   : > { %v865_v28 = vadd.f32 %v1230_v8, %v864_v27 }
 0x1d6   : > { %928 = vst [vmem:[%s2415_s20 + $0x28] sm:$0xff] %v870_v26  ;;  %v1326_v29 = vpop.f32.mrb[4].mxu1 }
 0x1d7   : > { %v910_v30 = vadd.f32 %v1326_v29, %v1230_v8  ;;  %927 = vst [vmem:[%s2415_s20 + $0x20] sm:$0xff] %v865_v28  ;;  %v904_v31 = vpop.f32.mrb[5].mxu1 }
 0x1d8   : > { %v905_v32 = vadd.f32 %v1230_v8, %v904_v31 }
 0x1d9   : > { %936 = vst [vmem:[%s2415_s20 + $0x68] sm:$0xff] %v910_v30 }
 0x1da   : > { %935 = vst [vmem:[%s2415_s20 + $0x60] sm:$0xff] %v905_v32 }
 0x1e7   : > { %v1317_v33 = vpop.f32.mrb[6].mxu0 }
 0x1e8   : > { %v880_v34 = vadd.f32 %v1317_v33, %v1230_v8  ;;  %v874_v35 = vpop.f32.mrb[7].mxu0 }
 0x1e9   : > { %v1329_v36 = vpop.f32.mrb[6].mxu1  ;;  %v875_v37 = vadd.f32 %v1230_v8, %v874_v35 }
 0x1ea   : > { %930 = vst [vmem:[%s2415_s20 + $0x38] sm:$0xff] %v880_v34  ;;  %v920_v38 = vadd.f32 %v1329_v36, %v1230_v8  ;;  %v914_v41 = vpop.f32.mrb[7].mxu1 }
 0x1eb   : > { %929 = vst [vmem:[%s2415_s20 + $0x30] sm:$0xff] %v875_v37  ;;  %v915_v42 = vadd.f32 %v1230_v8, %v914_v41 }
 0x1ec   : > { %938 = vst [vmem:[%s2415_s20 + $0x78] sm:$0xff] %v920_v38 }
 0x1ed   : > { %937 = vst [vmem:[%s2415_s20 + $0x70] sm:$0xff] %v915_v42 }
 0x1ee   : > { %1733 = shalt.err (!%p1730_p8)
}
 0x1ef   : > { %s1734_s15 = scalar_lea.hbm %s2437_s22, 2048  ;;  %s1738_s29 = scalar_lea.hbm %s2566_s23, 8192 }
 0x1f0   : > { %p1735_p12 = scmp.ne.s32.totalorder %s2437_s22, %s1734_s15  ;;  %p1739_p7 = scmp.lt.u32.totalorder %s2437_s22, %s2566_s23 }
 0x1f1   : > { %p1740_p10 = scmp.lt.u32.totalorder %s1738_s29, %s1734_s15  ;;  %p1742_p11 = scmp.lt.u32.totalorder %s1734_s15, %s2437_s22 }
 0x1f2   : > { %p1736_p9 = pnand %p1735_p12, %p2564_p13 }
 0x1f3   : > { %p1741_p5 = por %p1740_p10, %p1739_p7 }
 0x1f4   : > { %p1737_p3 = pneg %p1736_p9 }
 0x1f5   : > { %p1743_p1 = por %p1742_p11, %p1741_p5 }
 0x1f7   : > { %p1744_p0 = pnand %p1743_p1, %p1737_p3 }
 0x1f9   : > { %1747 = shalt.err (!%p1744_p0)
}
 0x1fa   : > { %1398 = dma.vmem_to_hbm [thread:$0]  (%p2564_p13), %s2439_s19, 2048, %s2437_s22, %s945_s14, %s1875_s30, %s1875_s30, %s1876_s21  }
 0x1fb PF: > { %s2567_s6 = sld [smem:[#allocation23_spill]]  ;;  %s2568_s17 = sld [smem:[#allocation31_spill]] }
 0x1fc   : > { %p1414_p4 = scmp.ge.s32.totalorder %s1858_s11, 2 }
 0x201   : > { %s993_s7 = sand.u32 1, %s2567_s6   ;;  %p2569_p6 = scmp.ne.s32.totalorder %s2568_s17, 0 }
 0x202   : > { %s994_s12 = scalar_lea.sflag [#allocation4], %s993_s7 }
 0x203   : > { %p1406_p2 = pnand %p1414_p4, %p2569_p6 }
 0x205   : > { %1809 = dma.done.wait (!%p1406_p2), %s994_s12, 2048  }
 0x206   : > { %1811 = vsyncadd (!%p1406_p2), %s994_s12, 4294965248  ;;  %s1003_s18 = scalar_lea.sflag [#allocation13], %s993_s7 }
 0x207   : > { %1813 = dma.done.wait (!%p1406_p2), %s1003_s18, 2048  }
 0x208   : > { %1815 = vsyncadd (!%p1406_p2), %s1003_s18, 4294965248  ;;  %s33_s11 = sadd.s32 1, %s1858_s11   ;;  %s2570_s13 = sld [smem:[#allocation29_spill]] }
 0x209   : > { %p30_p8 = scmp.ge.s32.totalorder %s33_s11, 6   ;;  %s2571_s30 = sld [smem:[#allocation24_spill]] }
 0x20a   : > { %s2572_s29 = sld [smem:[#allocation28_spill]]  ;;  %s2573_s21 = sld [smem:[#allocation26_spill]] }
 0x20b   : > { %s2574_s19 = sld [smem:[#allocation27_spill]]  ;;  %s2575_s24 = smov %s1822_s25 }
 0x20c   : > { %s2576_s25 = smov %s1826_s26  ;;  %s2578_s27 = smov %s1834_s28 }
 0x20d   : > { %s2581_s8 = smov %s1854_s10  ;;  %32 = sbr.rel (!%p30_p8) target bundleno = 20 (0x14), region = 153 }
 0x20e   : > { %s2577_s26 = smov %s2570_s13 }
 0x20f   : > { %s2579_s28 = smov %s2571_s30  ;;  %s2580_s30 = smov %s1850_s9 }
 0x210   : > { %s2582_s9 = smov %s2573_s21 }
 0x211   : > { %s2583_s10 = smov %s2574_s19 }
 0x214   :  { %1008 = vsyncpa [#allocation3], 1 }
 0x215   :  { %1010 = vsyncpa [#allocation3 + $0x1], 1 }
 0x216   :  { %1011 = vsyncpa [#allocation6], 1 }
 0x217   :  { %1013 = vsyncpa [#allocation6 + $0x1], 1 }
 0x218   :  { %1014 = vsyncpa [#allocation9], 1 }
 0x219   :  { %1016 = vsyncpa [#allocation9 + $0x1], 1 }
 0x21a   :  { %1017 = vsyncpa [#allocation4], 1 }
 0x21b   :  { %1019 = vsyncpa [#allocation4 + $0x1], 1 }
 0x21c   :  { %1020 = vsyncpa [#allocation13], 1 }
 0x21d   :  { %1022 = vsyncpa [#allocation13 + $0x1], 1 }

</bundles_post_ra>
